<compile_context>
chip_gen: v5e
topology: v5e:2x2
jax: 0.10.0
libtpu: 0.0.40
codegen_flags: <defaults>
</compile_context>

<pallas_src>
import jax
import jax.numpy as jnp
from jax import lax
from jax.experimental import pallas as pl
from jax.experimental.pallas import tpu as pltpu


def nn_1_sig_kernel(x_ref, w0_ref, b0_ref, w1_ref, b1_ref, o_ref):
    # x_ref / o_ref: (TS, 128) tiles of the flat row-major view of (B, 2):
    #   even lanes hold feature 0, odd lanes hold feature 1 of the same sample.
    t = x_ref[...]
    C = t.shape[-1]

    lane = lax.broadcasted_iota(jnp.int32, t.shape, 1)
    even = (lane & 1) == 0                          # lane parity == feature index

    left = pltpu.roll(t, shift=1, axis=1)           # t[l-1] (jnp.roll convention)
    right = pltpu.roll(t, shift=C - 1, axis=1)      # t[l+1]

    # Broadcast each sample's (x0, x1) pair onto both of its lanes.  The wrapped
    # lanes (lane 0 for `left`, lane C-1 for `right`) are never selected.
    x0 = jnp.where(even, t, left)
    x1 = jnp.where(even, right, t)

    # Layer 0 + sigmoid: SMEM scalar weights, VPU FMAs, EUP logistic (f32 math).
    h0 = lax.logistic(x0 * w0_ref[0, 0] + x1 * w0_ref[1, 0] + b0_ref[0])
    h1 = lax.logistic(x0 * w0_ref[0, 1] + x1 * w0_ref[1, 1] + b0_ref[1])

    # Layer 1, with the even/odd output select folded into per-lane weights so each
    # lane only computes the output column it actually stores.
    v0 = jnp.where(even, w1_ref[0, 0], w1_ref[0, 1])
    v1 = jnp.where(even, w1_ref[1, 0], w1_ref[1, 1])
    c = jnp.where(even, b1_ref[0], b1_ref[1])
    o_ref[...] = (h0 * v0 + h1 * v1 + c).astype(o_ref.dtype)


def _round_up(v, m):
    return ((v + m - 1) // m) * m


def nn_1_sig(x, w0, b0, w1, b1, *, max_block_rows=4096, target_grid_steps=8):
    """Forward pass y = sigmoid(x @ w0 + b0) @ w1 + b1 as a fused Pallas kernel.

    x: (B, 2); w0, w1: (2, 2); b0, b1: (2,).  Returns (B, 2) in x.dtype.
    """
    B, F = x.shape
    assert F == 2 and w0.shape == (2, 2) and w1.shape == (2, 2)

    C = 128                        # lanes per row of the flat view
    N = B * F                      # total scalars; feature pairs are lane-adjacent
    R = max(pl.cdiv(N, C), 8)      # rows of the (R, C) view (>= one (8,128) tile)

    flat = x.reshape(N)            # free view of the row-major data
    if R * C != N:
        # Only hit when B is not a multiple of 64; costs one extra copy of x.
        flat = jnp.pad(flat, (0, R * C - N))
    xv = flat.reshape(R, C)

    # Rows per block: multiple of 8, sized for ~target_grid_steps pipeline steps,
    # capped at 2 MiB/block so in+out double-buffers stay well inside scoped VMEM
    # on all generations (v5e/v6e/v7x).
    TS = _round_up(pl.cdiv(R, target_grid_steps), 8)
    TS = max(8, min(TS, max_block_rows, _round_up(R, 8)))
    grid = (pl.cdiv(R, TS),)       # trailing partial row-block is masked by Pallas

    smem = pl.BlockSpec(memory_space=pltpu.MemorySpace.SMEM)
    f32 = jnp.float32

    out_v = pl.pallas_call(
        nn_1_sig_kernel,
        out_shape=jax.ShapeDtypeStruct((R, C), x.dtype),
        grid=grid,
        in_specs=[
            pl.BlockSpec((TS, C), lambda i: (i, 0)),   # x rows (lane+sublane dense)
            smem,                                      # w0 (scalars)
            smem,                                      # b0
            smem,                                      # w1
            smem,                                      # b1
        ],
        out_specs=pl.BlockSpec((TS, C), lambda i: (i, 0)),
        compiler_params=pltpu.CompilerParams(
            dimension_semantics=("parallel",),
            vmem_limit_bytes=32 * 1024 * 1024,
        ),
    )(xv, w0.astype(f32), b0.astype(f32), w1.astype(f32), b1.astype(f32))

    out_flat = out_v.reshape(R * C)
    if R * C != N:
        out_flat = out_flat[:N]    # only on the padded (unaligned-B) path
    return out_flat.reshape(B, F)


def nn_1_sig_ref(x, w0, b0, w1, b1):
    h = jax.nn.sigmoid(x @ w0 + b0)
    return h @ w1 + b1


if __name__ == "__main__":
    key = jax.random.PRNGKey(0)
    k_x, k_w0, k_b0, k_w1, k_b1 = jax.random.split(key, 5)

    din = dout = 2
    # LinearLayer convention: W (din, dout), b (dout,); y = x @ W + b.
    w0 = jax.random.normal(k_w0, (din, dout), dtype=jnp.float32) * 0.5
    b0 = jax.random.normal(k_b0, (dout,), dtype=jnp.float32) * 0.1
    w1 = jax.random.normal(k_w1, (dout, dout), dtype=jnp.float32) * 0.5
    b1 = jax.random.normal(k_b1, (dout,), dtype=jnp.float32) * 0.1

    # Small primary case (matches the homework's toy batches), plus a batch that
    # exercises the zero-copy path with a partial trailing row-block (B = 13*64).
    for batch in (8, 832):
        kx = jax.random.fold_in(k_x, batch)
        x = jax.random.normal(kx, (batch, din), dtype=jnp.float32)

        out = jax.block_until_ready(nn_1_sig(x, w0, b0, w1, b1))
        ref = nn_1_sig_ref(x, w0, b0, w1, b1)

        assert out.shape == (batch, dout)
        assert jnp.allclose(out, ref, atol=1e-5, rtol=1e-5), f"mismatch at batch={batch}"

    print("KERNEL_OK")
</pallas_src>

<mosaic_0001>
module attributes {stable_mosaic.version = 11 : i64} {
  func.func @nn_1_sig_kernel(%arg0: i32, %arg1: memref<8x128xf32, #tpu.memory_space<vmem>>, %arg2: memref<2x2xf32, #tpu.memory_space<smem>>, %arg3: memref<2xf32, #tpu.memory_space<smem>>, %arg4: memref<2x2xf32, #tpu.memory_space<smem>>, %arg5: memref<2xf32, #tpu.memory_space<smem>>, %arg6: memref<8x128xf32, #tpu.memory_space<vmem>>) attributes {dimension_semantics = [#tpu.dimension_semantics<parallel>], iteration_bounds = array<i64: 1>, scalar_prefetch = 0 : i64, scratch_operands = 0 : i64, tpu.core_type = #tpu.core_type<tc>, window_params = [{transform_indices = @transform_0, window_bounds = array<i64: 8, 128>}, {transform_indices = @transform_1, window_bounds = array<i64: 2, 2>}, {transform_indices = @transform_2, window_bounds = array<i64: 2>}, {transform_indices = @transform_3, window_bounds = array<i64: 2, 2>}, {transform_indices = @transform_4, window_bounds = array<i64: 2>}, {transform_indices = @transform_5, window_bounds = array<i64: 8, 128>}]} {
    %c0 = arith.constant 0 : index
    %c0_0 = arith.constant 0 : index
    %0 = vector.load %arg1[%c0, %c0_0] : memref<8x128xf32, #tpu.memory_space<vmem>>, vector<8x128xf32>
    %1 = tpu.iota {dimensions = array<i32: 1>} : vector<8x128xi32>
    %c1_i32 = arith.constant 1 : i32
    %2 = vector.broadcast %c1_i32 : i32 to vector<8x128xi32>
    %3 = arith.andi %1, %2 : vector<8x128xi32>
    %c0_i32 = arith.constant 0 : i32
    %4 = vector.broadcast %c0_i32 : i32 to vector<8x128xi32>
    %5 = arith.cmpi eq, %3, %4 : vector<8x128xi32>
    %c1_i32_1 = arith.constant 1 : i32
    %6 = tpu.dynamic_rotate %0 by %c1_i32_1 dim 1 : vector<8x128xf32>, i32 -> vector<8x128xf32>
    %c127_i32 = arith.constant 127 : i32
    %7 = tpu.dynamic_rotate %0 by %c127_i32 dim 1 : vector<8x128xf32>, i32 -> vector<8x128xf32>
    %8 = arith.select %5, %0, %6 : vector<8x128xi1>, vector<8x128xf32>
    %9 = arith.select %5, %7, %0 : vector<8x128xi1>, vector<8x128xf32>
    %c0_2 = arith.constant 0 : index
    %c0_3 = arith.constant 0 : index
    %10 = memref.load %arg2[%c0_2, %c0_3] : memref<2x2xf32, #tpu.memory_space<smem>>
    %11 = vector.broadcast %10 : f32 to vector<8x128xf32>
    %12 = arith.mulf %8, %11 : vector<8x128xf32>
    %c1 = arith.constant 1 : index
    %c0_4 = arith.constant 0 : index
    %13 = memref.load %arg2[%c1, %c0_4] : memref<2x2xf32, #tpu.memory_space<smem>>
    %14 = vector.broadcast %13 : f32 to vector<8x128xf32>
    %15 = arith.mulf %9, %14 : vector<8x128xf32>
    %16 = arith.addf %12, %15 : vector<8x128xf32>
    %c0_5 = arith.constant 0 : index
    %17 = memref.load %arg3[%c0_5] : memref<2xf32, #tpu.memory_space<smem>>
    %18 = vector.broadcast %17 : f32 to vector<8x128xf32>
    %19 = arith.addf %16, %18 : vector<8x128xf32>
    %20 = arith.negf %19 : vector<8x128xf32>
    %21 = math.exp %20 : vector<8x128xf32>
    %cst = arith.constant 1.000000e+00 : f32
    %22 = vector.broadcast %cst : f32 to vector<8x128xf32>
    %23 = arith.addf %22, %21 : vector<8x128xf32>
    %24 = arith.divf %22, %23 : vector<8x128xf32>
    %c0_6 = arith.constant 0 : index
    %c1_7 = arith.constant 1 : index
    %25 = memref.load %arg2[%c0_6, %c1_7] : memref<2x2xf32, #tpu.memory_space<smem>>
    %26 = vector.broadcast %25 : f32 to vector<8x128xf32>
    %27 = arith.mulf %8, %26 : vector<8x128xf32>
    %c1_8 = arith.constant 1 : index
    %c1_9 = arith.constant 1 : index
    %28 = memref.load %arg2[%c1_8, %c1_9] : memref<2x2xf32, #tpu.memory_space<smem>>
    %29 = vector.broadcast %28 : f32 to vector<8x128xf32>
    %30 = arith.mulf %9, %29 : vector<8x128xf32>
    %31 = arith.addf %27, %30 : vector<8x128xf32>
    %c1_10 = arith.constant 1 : index
    %32 = memref.load %arg3[%c1_10] : memref<2xf32, #tpu.memory_space<smem>>
    %33 = vector.broadcast %32 : f32 to vector<8x128xf32>
    %34 = arith.addf %31, %33 : vector<8x128xf32>
    %35 = arith.negf %34 : vector<8x128xf32>
    %36 = math.exp %35 : vector<8x128xf32>
    %cst_11 = arith.constant 1.000000e+00 : f32
    %37 = vector.broadcast %cst_11 : f32 to vector<8x128xf32>
    %38 = arith.addf %37, %36 : vector<8x128xf32>
    %39 = arith.divf %37, %38 : vector<8x128xf32>
    %c0_12 = arith.constant 0 : index
    %c0_13 = arith.constant 0 : index
    %40 = memref.load %arg4[%c0_12, %c0_13] : memref<2x2xf32, #tpu.memory_space<smem>>
    %c0_14 = arith.constant 0 : index
    %c1_15 = arith.constant 1 : index
    %41 = memref.load %arg4[%c0_14, %c1_15] : memref<2x2xf32, #tpu.memory_space<smem>>
    %42 = vector.broadcast %40 : f32 to vector<8x128xf32>
    %43 = vector.broadcast %41 : f32 to vector<8x128xf32>
    %44 = arith.select %5, %42, %43 : vector<8x128xi1>, vector<8x128xf32>
    %c1_16 = arith.constant 1 : index
    %c0_17 = arith.constant 0 : index
    %45 = memref.load %arg4[%c1_16, %c0_17] : memref<2x2xf32, #tpu.memory_space<smem>>
    %c1_18 = arith.constant 1 : index
    %c1_19 = arith.constant 1 : index
    %46 = memref.load %arg4[%c1_18, %c1_19] : memref<2x2xf32, #tpu.memory_space<smem>>
    %47 = vector.broadcast %45 : f32 to vector<8x128xf32>
    %48 = vector.broadcast %46 : f32 to vector<8x128xf32>
    %49 = arith.select %5, %47, %48 : vector<8x128xi1>, vector<8x128xf32>
    %c0_20 = arith.constant 0 : index
    %50 = memref.load %arg5[%c0_20] : memref<2xf32, #tpu.memory_space<smem>>
    %c1_21 = arith.constant 1 : index
    %51 = memref.load %arg5[%c1_21] : memref<2xf32, #tpu.memory_space<smem>>
    %52 = vector.broadcast %50 : f32 to vector<8x128xf32>
    %53 = vector.broadcast %51 : f32 to vector<8x128xf32>
    %54 = arith.select %5, %52, %53 : vector<8x128xi1>, vector<8x128xf32>
    %55 = arith.mulf %24, %44 : vector<8x128xf32>
    %56 = arith.mulf %39, %49 : vector<8x128xf32>
    %57 = arith.addf %55, %56 : vector<8x128xf32>
    %58 = arith.addf %57, %54 : vector<8x128xf32>
    %c0_22 = arith.constant 0 : index
    %c0_23 = arith.constant 0 : index
    %59 = vector.load %arg6[%c0_22, %c0_23] : memref<8x128xf32, #tpu.memory_space<vmem>>, vector<8x128xf32>
    tpu.vector_store %arg6[%c0_22, %c0_23], %58 {strides = array<i32>} : memref<8x128xf32, #tpu.memory_space<vmem>>, vector<8x128xf32>,
    return
  }
  func.func @transform_0(%arg0: i32) -> (i32, i32) {
    %c0_i32 = arith.constant 0 : i32
    %c0_i32_0 = arith.constant 0 : i32
    return %arg0, %c0_i32 : i32, i32
  }
  func.func @transform_1(%arg0: i32) -> (i32, i32) {
    %c0_i32 = arith.constant 0 : i32
    %c0_i32_0 = arith.constant 0 : i32
    %c0_i32_1 = arith.constant 0 : i32
    return %c0_i32, %c0_i32_0 : i32, i32
  }
  func.func @transform_2(%arg0: i32) -> i32 {
    %c0_i32 = arith.constant 0 : i32
    %c0_i32_0 = arith.constant 0 : i32
    return %c0_i32 : i32
  }
  func.func @transform_3(%arg0: i32) -> (i32, i32) {
    %c0_i32 = arith.constant 0 : i32
    %c0_i32_0 = arith.constant 0 : i32
    %c0_i32_1 = arith.constant 0 : i32
    return %c0_i32, %c0_i32_0 : i32, i32
  }
  func.func @transform_4(%arg0: i32) -> i32 {
    %c0_i32 = arith.constant 0 : i32
    %c0_i32_0 = arith.constant 0 : i32
    return %c0_i32 : i32
  }
  func.func @transform_5(%arg0: i32) -> (i32, i32) {
    %c0_i32 = arith.constant 0 : i32
    %c0_i32_0 = arith.constant 0 : i32
    return %arg0, %c0_i32 : i32, i32
  }
}

</mosaic_0001>

<bundles_post_ra>
// kernel: tpu_custom_call.1
= control target key start
LH: loop header
LB: loop body
LE: loop exit
PB: predicated region body
PF: predicated region fallthrough
CT: control target
= control target key end

     0   :  { %10 = vsyncpa [#allocation3], 0  ;;  %s404_s0 = inlined_call_operand.hbm [shape: f32[8,128], index: 0, kind: input, shape index: {}]   ;;  %s405_s1 = inlined_call_operand.hbm [shape: f32[2,2], index: 1, kind: input, shape index: {}]   ;;  %s406_s2 = inlined_call_operand.hbm [shape: f32[2], index: 2, kind: input, shape index: {}]   ;;  %s407_s3 = inlined_call_operand.vmem [shape: f32[2,2], index: 3, kind: input, shape index: {}]   ;;  %s408_s4 = inlined_call_operand.vmem [shape: f32[2], index: 4, kind: input, shape index: {}]   ;;  %s409_s5 = inlined_call_operand.hbm [shape: f32[8,128], index: 5, kind: output, shape index: {}]  }
   0x1   :  { %11 = vsyncpa [#allocation5], 0 }
   0x2   :  { %12 = vsyncpa [#allocation9], 0 }
   0x3   :  { %13 = vsyncpa [#allocation6], 0 }
   0x4   :  { %14 = vsyncpa [#allocation12], 0 }
   0x5   :  { %15 = vsyncpa [#allocation4], 0  ;;  %s21_s20 = sshll.u32 %s404_s0, 4  ;;  %s328_s21 = smov [#allocation2]   ;;  %s22_s20 = int_to_ptr.hbm [resolvable:$true] %s21_s20 }
   0x6   :  { %s23_s22 = sshll.u32 %s328_s21, 4  ;;  %s32_s25 = sshll.u32 %s405_s1, 4  ;;  %s24_s22 = int_to_ptr.vmem [resolvable:$true] %s23_s22  ;;  %s33_s25 = int_to_ptr.hbm [resolvable:$true] %s32_s25 }
   0x7   :  { %26 = dma.hbm_to_vmem [thread:$0]  %s22_s20, 128, %s24_s22, [#allocation3]  }
   0x8   :  { %s329_s26 = smov [#allocation7]   ;;  %s41_s29 = sshll.u32 %s406_s2, 4  ;;  %s42_s29 = int_to_ptr.hbm [resolvable:$true] %s41_s29 }
   0x9   :  { %35 = dma.hbm_to_smem %s33_s25, 32, %s329_s26, [#allocation5]  }
   0xa   :  { %s50_s0 = sshll.u32 %s407_s3, 4  ;;  %s330_s7 = smov [#allocation8]   ;;  %s51_s0 = int_to_ptr.vmem [resolvable:$true] %s50_s0 }
   0xb   :  { %44 = dma.hbm_to_smem %s42_s29, 16, %s330_s7, [#allocation9]  }
   0xc   :  { %s331_s8 = smov [#allocation10]   ;;  %s59_s10 = sshll.u32 %s408_s4, 4  ;;  %s60_s10 = int_to_ptr.vmem [resolvable:$true] %s59_s10 }
   0xd   :  { %53 = dma.vmem_to_smem %s51_s0, 32, %s331_s8, [#allocation6]  }
   0xe   :  { %s332_s11 = smov [#allocation11]  }
   0xf   :  { %62 = dma.vmem_to_smem %s60_s10, 16, %s332_s11, [#allocation12]  }
  0x10   :  { %316 = dma.done.wait [#allocation3], 128  }
  0x11   :  { %317 = vsyncadd [#allocation3], 4294967168 }
  0x12   :  { %318 = dma.done.wait [#allocation5], 32  }
  0x13   :  { %319 = vsyncadd [#allocation5], 4294967264 }
  0x14   :  { %320 = dma.done.wait [#allocation9], 16  }
  0x15   :  { %321 = vsyncadd [#allocation9], 4294967280 }
  0x16   :  { %322 = dma.done.wait [#allocation6], 32  }
  0x17   :  { %323 = vsyncadd [#allocation6], 4294967264 }
  0x18   :  { %324 = dma.done.wait [#allocation12], 16  }
  0x19   :  { %325 = vsyncadd [#allocation12], 4294967280 }
  0x1a   :  { %83 = sfence }
  0x1b   :  { %v84_v0 = vld [vmem:[#allocation2] sm:$0xff]  ;;  %s333_s2 = smov 1   ;;  %s334_s3 = smov 127   ;;  %v85_v1 = vlaneseq }
  0x1c   :  { %89 = vrot.lane.b32.xlu0 %v84_v0, %s333_s2  ;;  %s95_s4 = sld [smem:[#allocation7]]  ;;  %s335_s23 = smov [#allocation13]  }
  0x1d   :  { %v86_v2 = vand.u32 127, %v85_v1  ;;  %s196_s12 = sld [smem:[#allocation7 + $0x1]]  ;;  %s178_s24 = sshll.u32 %s335_s23, 4  ;;  %s179_s24 = int_to_ptr.vmem [resolvable:$true] %s178_s24 }
  0x1e   :  { %s194_s13 = sld [smem:[#allocation7 + $0x80]]  ;;  %s180_s27 = sshll.u32 %s409_s5, 4  ;;  %s181_s27 = int_to_ptr.hbm [resolvable:$true] %s180_s27 }
  0x1f   :  { %s197_s14 = sld [smem:[#allocation7 + $0x81]]  ;;  %v87_v3 = vand.u32 1, %v86_v2 }
  0x20   :  { %s102_s15 = sld [smem:[#allocation8]] }
  0x21   :  { %s198_s16 = sld [smem:[#allocation8 + $0x1]]  ;;  %vm381_vm0 = vcmp.eq.s32.totalorder %v87_v3, 0 }
  0x22   :  { %v96_v6 = vstv %s95_s4  ;;  %s153_s17 = sld [smem:[#allocation10]] }
  0x23   :  { %v125_v7 = vstv %s196_s12  ;;  %s200_s18 = sld [smem:[#allocation10 + $0x1]] }
  0x24   :  { %91 = vrot.lane.b32.xlu0 %v84_v0, %s334_s3  ;;  %v99_v9 = vstv %s194_s13  ;;  %s201_s19 = sld [smem:[#allocation10 + $0x80]] }
  0x25   :  { %v128_v10 = vstv %s197_s14  ;;  %s202_s20 = sld [smem:[#allocation10 + $0x81]] }
  0x26   :  { %v103_v17 = vstv %s102_s15  ;;  %s389_s21 = sld [smem:[#allocation11]] }
  0x27   :  { %v132_v18 = vstv %s198_s16  ;;  %s391_s22 = sld [smem:[#allocation11 + $0x1]] }
  0x28   :  { %v155_v34 = vstv %s153_s17 }
  0x29   :  { %v156_v35 = vstv %s200_s18 }
  0x2a   :  { %v160_v38 = vstv %s201_s19  ;;  %v157_v46 = vsel %vm381_vm0, %v155_v34, %v156_v35 }
  0x2b   :  { %v161_v39 = vstv %s202_s20 }
  0x2c   :  { %v162_v49 = vsel %vm381_vm0, %v160_v38, %v161_v39  ;;  %v165_v52 = vstv %s389_s21 }
  0x2d   :  { %v166_v55 = vstv %s391_s22 }
  0x2e   :  { %v167_v59 = vsel %vm381_vm0, %v165_v52, %v166_v55 }
  0x8e   :  { %v90_v4 = vpop.permute.xlu0 %89 }
  0x8f   :  { %v93_v8 = vsel %vm381_vm0, %v84_v0, %v90_v4 }
  0x90   :  { %v97_v13 = vmul.f32 %v96_v6, %v93_v8  ;;  %v126_v14 = vmul.f32 %v125_v7, %v93_v8 }
  0x96   :  { %v92_v11 = vpop.permute.xlu0 %91 }
  0x97   :  { %v94_v12 = vsel %vm381_vm0, %v92_v11, %v84_v0 }
  0x98   :  { %v100_v15 = vmul.f32 %v99_v9, %v94_v12  ;;  %v129_v16 = vmul.f32 %v128_v10, %v94_v12 }
  0x9a   :  { %v101_v19 = vadd.f32 %v100_v15, %v97_v13  ;;  %v130_v20 = vadd.f32 %v129_v16, %v126_v14 }
  0x9c   :  { %v104_v21 = vadd.f32 %v103_v17, %v101_v19  ;;  %v133_v22 = vadd.f32 %v132_v18, %v130_v20 }
  0x9e   :  { %v195_v23 = vmul.f32 -1.442695, %v104_v21  ;;  %v199_v24 = vmul.f32 -1.442695, %v133_v22 }
  0xa0   :  { %212 = vpow2.f32 %v195_v23 }
  0xa1   :  { %214 = vpow2.f32 %v199_v24 }
  0xa6   :  { %v213_v25 = vpop.eup %212 }
  0xa7   :  { %v215_v26 = vpop.eup %214  ;;  %v108_v27 = vadd.f32 1.0, %v213_v25 }
  0xa8   :  { %v137_v28 = vadd.f32 1.0, %v215_v26 }
  0xa9   :  { %216 = vrcp.f32 %v108_v27  ;;  %v120_v36 = vand.u32 2147483648, %v108_v27  ;;  %v118_v41 = vand.u32 2147483647, %v108_v27  ;;  %vm114_vm3 = vweird.f32 %v108_v27 }
  0xaa   :  { %218 = vrcp.f32 %v137_v28  ;;  %v149_v42 = vand.u32 2147483648, %v137_v28  ;;  %v147_v44 = vand.u32 2147483647, %v137_v28  ;;  %vm143_vm5 = vweird.f32 %v137_v28 }
  0xab   :  { %v121_v47 = vor.u32 1.1754944e-38, %v120_v36  ;;  %vm119_vm6 = vcmp.eq.f32.partialorder %v118_v41, 8.507059e+37 }
  0xac   :  { %v150_v51 = vor.u32 1.1754944e-38, %v149_v42  ;;  %vm148_vm8 = vcmp.eq.f32.partialorder %v147_v44, 8.507059e+37 }
  0xaf   :  { %v217_v29 = vpop.eup %216 }
  0xb0   :  { %v219_v30 = vpop.eup %218  ;;  %v110_v31 = vmul.f32 %v217_v29, %v108_v27  ;;  %vm115_vm1 = vweird.f32 %v217_v29 }
  0xb1   :  { %v139_v32 = vmul.f32 %v219_v30, %v137_v28  ;;  %vm144_vm2 = vweird.f32 %v219_v30  ;;  %vm116_vm4 = vmor %vm114_vm3, %vm115_vm1 }
  0xb2   :  { %v111_v33 = vsub.f32 1.0, %v110_v31  ;;  %vm145_vm7 = vmor %vm143_vm5, %vm144_vm2 }
  0xb3   :  { %v140_v37 = vsub.f32 1.0, %v139_v32 }
  0xb4   :  { %v112_v40 = vmul.f32 %v217_v29, %v111_v33 }
  0xb5   :  { %v141_v43 = vmul.f32 %v219_v30, %v140_v37 }
  0xb6   :  { %v113_v45 = vadd.f32 %v217_v29, %v112_v40 }
  0xb7   :  { %v142_v48 = vadd.f32 %v219_v30, %v141_v43 }
  0xb8   :  { %v117_v50 = vsel %vm116_vm4, %v217_v29, %v113_v45 }
  0xb9   :  { %v122_v53 = vsel %vm119_vm6, %v121_v47, %v117_v50  ;;  %v146_v54 = vsel %vm145_vm7, %v219_v30, %v142_v48 }
  0xba   :  { %v151_v56 = vsel %vm148_vm8, %v150_v51, %v146_v54  ;;  %v168_v57 = vmul.f32 %v157_v46, %v122_v53 }
  0xbb   :  { %v169_v58 = vmul.f32 %v162_v49, %v151_v56 }
  0xbd   :  { %v170_v60 = vadd.f32 %v169_v58, %v168_v57 }
  0xbf   :  { %v171_v61 = vadd.f32 %v170_v60, %v167_v59 }
  0xc1   :  { %172 = vst [vmem:[#allocation13] sm:$0xff] %v171_v61 }
  0xc2   :  { %183 = dma.vmem_to_hbm [thread:$0]  %s179_s24, 128, %s181_s27, [#allocation4]  }
  0xc3   :  { %326 = dma.done.wait [#allocation4], 128  }
  0xc4   :  { %327 = vsyncadd [#allocation4], 4294967168 }
  0xc5   :  { %188 = vsyncpa [#allocation3], 1 }
  0xc6   :  { %189 = vsyncpa [#allocation4], 1 }
  0xc7   :  { %190 = vsyncpa [#allocation5], 1 }
  0xc8   :  { %191 = vsyncpa [#allocation9], 1 }
  0xc9   :  { %192 = vsyncpa [#allocation6], 1 }
  0xca   :  { %193 = vsyncpa [#allocation12], 1 }

</bundles_post_ra>
